<compile_context>
chip_gen: v7x
topology: tpu7x:2x2x1
jax: 0.10.0
libtpu: 0.0.40
codegen_flags: <defaults>
</compile_context>

<pallas_src>
import numpy as np
import jax
import jax.numpy as jnp
from jax.experimental import pallas as pl
from jax.experimental.pallas import tpu as pltpu

# ----------------------- model hyper-parameters (small) ---------------------
VOCAB_SIZE = 50
SEQ_LENGTH = 8          # L
EMBED_SIZE = 32         # E
NUM_LABELS = 8
FILTER_SIZES = (3, 4, 5)
NUM_FEATURE_MAPS = 16   # F
BATCH = 4               # B

KMAX = max(FILTER_SIZES)
assert SEQ_LENGTH >= KMAX, "every filter size needs at least one valid position"
KE = KMAX * EMBED_SIZE                        # im2col window width (5*32=160)
F3 = NUM_FEATURE_MAPS * len(FILTER_SIZES)     # fused conv output width (48)

_B_TILE_MAX = 512       # keeps double-buffered input block + scratch << VMEM limits


def textcnn_kernel(xp_ref, mask_ref, wc_ref, bc_ref, wo_ref, bo_ref, out_ref):
    """In-kernel im2col + fused conv (one matmul) + masked max-pool + ReLU +
    Linear + log_softmax for one batch tile."""
    bt = xp_ref.shape[0]
    seq_len = mask_ref.shape[0]
    e = xp_ref.shape[2]
    kmax = xp_ref.shape[1] - seq_len + 1
    f3 = wc_ref.shape[1]

    # In-kernel im2col: KMAX sublane-shifted slices of the padded embedding,
    # lane-concatenated into the (bt*L, KMAX*E) matmul operand (bf16).
    xp = xp_ref[...]                                           # (bt, L+KMAX-1, E)
    slab = jnp.concatenate(
        [xp[:, i:i + seq_len, :] for i in range(kmax)], axis=-1)   # (bt, L, KE)
    x2 = slab.reshape(bt * seq_len, kmax * e)

    # One MXU matmul for all filter sizes (bf16 operands, f32 accumulation).
    conv = jnp.dot(x2, wc_ref[...], preferred_element_type=jnp.float32)

    # Mask positions invalid for each filter size, then max-pool over sequence.
    conv = conv.reshape(bt, seq_len, f3) + mask_ref[...][None, :, :]
    pooled = jnp.max(conv, axis=1)                             # (bt, 3F)

    # Bias + ReLU hoisted out of the position loop (monotone / position-invariant).
    feats = jnp.maximum(pooled + bc_ref[...], 0.0)             # (bt, 3F)

    # TODO(synk): dropout is identity (eval mode).
    logits = jnp.dot(feats, wo_ref[...],
                     preferred_element_type=jnp.float32) + bo_ref[...]

    # log_softmax over the (small) label axis.
    m = jnp.max(logits, axis=-1, keepdims=True)
    s = logits - m
    out_ref[...] = s - jnp.log(jnp.sum(jnp.exp(s), axis=-1, keepdims=True))


def init_params(key):
    ks = jax.random.split(key, 2 + 2 * len(FILTER_SIZES) + 2)
    params = {}
    params["embedding"] = 0.1 * jax.random.normal(
        ks[0], (VOCAB_SIZE, EMBED_SIZE), jnp.float32)
    for idx, k in enumerate(FILTER_SIZES):
        # PyTorch Conv2d weight is (F, 1, k, E); stored here as (k, E, F).
        params[f"conv{k}_w"] = 0.1 * jax.random.normal(
            ks[1 + 2 * idx], (k, EMBED_SIZE, NUM_FEATURE_MAPS), jnp.float32)
        params[f"conv{k}_b"] = 0.1 * jax.random.normal(
            ks[2 + 2 * idx], (1, NUM_FEATURE_MAPS), jnp.float32)
    # PyTorch Linear weight is (num_labels, 3F); stored here as (3F, num_labels).
    params["out_w"] = 0.1 * jax.random.normal(
        ks[-2], (NUM_FEATURE_MAPS * len(FILTER_SIZES), NUM_LABELS), jnp.float32)
    params["out_b"] = 0.1 * jax.random.normal(
        ks[-1], (1, NUM_LABELS), jnp.float32)

    # Pack the 3 conv weights/biases ONCE at init (hoisted out of the forward):
    # W_big is (KMAX*E, 3F) with zero rows where a filter doesn't reach; bf16
    # so the dominant matmul runs with bf16 operands on the MXU.
    cols, biases = [], []
    for k in FILTER_SIZES:
        w = params[f"conv{k}_w"].reshape(k * EMBED_SIZE, NUM_FEATURE_MAPS)
        cols.append(jnp.pad(w, ((0, KE - k * EMBED_SIZE), (0, 0))))
        biases.append(params[f"conv{k}_b"])
    params["conv_w_packed"] = jnp.concatenate(cols, axis=1).astype(jnp.bfloat16)
    params["conv_b_packed"] = jnp.concatenate(biases, axis=1)   # f32
    return params


# Static mask (module-level constant): position t valid for filter k iff t <= L-k.
_MASK_NP = np.zeros((SEQ_LENGTH, F3), np.float32)
for _j, _k in enumerate(FILTER_SIZES):
    _MASK_NP[SEQ_LENGTH - _k + 1:,
             _j * NUM_FEATURE_MAPS:(_j + 1) * NUM_FEATURE_MAPS] = -1e30
_MASK = jnp.asarray(_MASK_NP)


def _batch_tiling(batch: int):
    """Pick (b_tile, padded_batch): b_tile a multiple of 8, capped at
    _B_TILE_MAX; >=2 grid steps whenever the batch allows (both v7x cores)."""
    if batch <= 8:
        b_tile = 8
    else:
        half = (batch + 1) // 2
        b_tile = min(_B_TILE_MAX, ((half + 7) // 8) * 8)
    padded = ((batch + b_tile - 1) // b_tile) * b_tile
    return b_tile, padded


@jax.jit
def textcnn_forward(input_seq, params):
    batch, seq_len = input_seq.shape
    assert seq_len == SEQ_LENGTH

    # Embedding lookup (gather) — plain-JAX glue.
    emb = params["embedding"][input_seq].astype(jnp.bfloat16)    # (B, L, E)

    # Pad batch to a tile multiple and the sequence end by KMAX-1 zeros so the
    # kernel can build all im2col windows in-place (no wrapper-side slab).
    b_tile, padded_batch = _batch_tiling(batch)
    xp = jnp.pad(emb, ((0, padded_batch - batch), (0, KMAX - 1), (0, 0)))
    lp = SEQ_LENGTH + KMAX - 1

    grid = (padded_batch // b_tile,)
    out = pl.pallas_call(
        textcnn_kernel,
        out_shape=jax.ShapeDtypeStruct((padded_batch, NUM_LABELS), jnp.float32),
        grid=grid,
        in_specs=[
            pl.BlockSpec((b_tile, lp, EMBED_SIZE), lambda b: (b, 0, 0)),  # padded emb
            pl.BlockSpec((SEQ_LENGTH, F3), lambda b: (0, 0)),             # mask
            pl.BlockSpec((KE, F3), lambda b: (0, 0)),                     # W_big (bf16)
            pl.BlockSpec((1, F3), lambda b: (0, 0)),                      # b_big
            pl.BlockSpec((F3, NUM_LABELS), lambda b: (0, 0)),             # Wo
            pl.BlockSpec((1, NUM_LABELS), lambda b: (0, 0)),              # bo
        ],
        out_specs=pl.BlockSpec((b_tile, NUM_LABELS), lambda b: (b, 0)),
        compiler_params=pltpu.CompilerParams(
            dimension_semantics=("parallel",)),
    )(xp, _MASK, params["conv_w_packed"], params["conv_b_packed"],
      params["out_w"], params["out_b"])
    return out[:batch]


def textcnn_reference(input_seq, params):
    """Pure-JAX f32 reference mirroring the PyTorch forward (eval mode)."""
    emb = params["embedding"][input_seq].astype(jnp.float32)     # (B, L, E)
    feats = []
    for k in FILTER_SIZES:
        w = params[f"conv{k}_w"]                                 # (k, E, F)
        b = params[f"conv{k}_b"]                                 # (1, F)
        outs = []
        for t in range(SEQ_LENGTH - k + 1):
            window = emb[:, t:t + k, :]                          # (B, k, E)
            outs.append(jnp.einsum("bke,kef->bf", window, w) + b)
        conv = jnp.maximum(jnp.stack(outs, axis=-1), 0.0)        # (B, F, T)
        feats.append(jnp.max(conv, axis=-1))                     # (B, F)
    x = jnp.concatenate(feats, axis=1)
    logits = x @ params["out_w"] + params["out_b"]
    return jax.nn.log_softmax(logits, axis=-1)


if __name__ == "__main__":
    key = jax.random.PRNGKey(0)
    pkey, dkey = jax.random.split(key)
    params = init_params(pkey)
    input_seq = jax.random.randint(dkey, (BATCH, SEQ_LENGTH), 0, VOCAB_SIZE,
                                   dtype=jnp.int32)

    out = textcnn_forward(input_seq, params)
    out = jax.block_until_ready(out)

    ref = textcnn_reference(input_seq, params)
    assert out.shape == (BATCH, NUM_LABELS)
    # bf16 operands on the dominant matmul -> relaxed tolerance vs f32 reference.
    assert jnp.allclose(out, ref, atol=2e-2, rtol=2e-2), "mismatch vs reference"
    print("KERNEL_OK")
</pallas_src>

<mosaic_0001>
module attributes {stable_mosaic.version = 11 : i64} {
  func.func @textcnn_kernel(%arg0: i32, %arg1: memref<8x12x32xbf16, #tpu.memory_space<vmem>>, %arg2: memref<8x48xf32, #tpu.memory_space<vmem>>, %arg3: memref<160x48xbf16, #tpu.memory_space<vmem>>, %arg4: memref<1x48xf32, #tpu.memory_space<vmem>>, %arg5: memref<48x8xf32, #tpu.memory_space<vmem>>, %arg6: memref<1x8xf32, #tpu.memory_space<vmem>>, %arg7: memref<8x8xf32, #tpu.memory_space<vmem>>) attributes {dimension_semantics = [#tpu.dimension_semantics<parallel>], iteration_bounds = array<i64: 1>, scalar_prefetch = 0 : i64, scratch_operands = 0 : i64, tpu.core_type = #tpu.core_type<tc>, window_params = [{transform_indices = @transform_0, window_bounds = array<i64: 8, 12, 32>}, {pipeline_mode = #tpu.pipeline_mode<synchronous>, transform_indices = @transform_1, window_bounds = array<i64: 8, 48>}, {pipeline_mode = #tpu.pipeline_mode<synchronous>, transform_indices = @transform_2, window_bounds = array<i64: 160, 48>}, {pipeline_mode = #tpu.pipeline_mode<synchronous>, transform_indices = @transform_3, window_bounds = array<i64: 1, 48>}, {pipeline_mode = #tpu.pipeline_mode<synchronous>, transform_indices = @transform_4, window_bounds = array<i64: 48, 8>}, {pipeline_mode = #tpu.pipeline_mode<synchronous>, transform_indices = @transform_5, window_bounds = array<i64: 1, 8>}, {transform_indices = @transform_6, window_bounds = array<i64: 8, 8>}]} {
    %c0 = arith.constant 0 : index
    %c0_0 = arith.constant 0 : index
    %c0_1 = arith.constant 0 : index
    %0 = vector.load %arg1[%c0, %c0_0, %c0_1] : memref<8x12x32xbf16, #tpu.memory_space<vmem>>, vector<8x12x32xbf16>
    %1 = vector.extract_strided_slice %0 {offsets = [0, 0, 0], sizes = [8, 8, 32], strides = [1, 1, 1]} : vector<8x12x32xbf16> to vector<8x8x32xbf16>
    %2 = vector.extract_strided_slice %0 {offsets = [0, 1, 0], sizes = [8, 8, 32], strides = [1, 1, 1]} : vector<8x12x32xbf16> to vector<8x8x32xbf16>
    %3 = vector.extract_strided_slice %0 {offsets = [0, 2, 0], sizes = [8, 8, 32], strides = [1, 1, 1]} : vector<8x12x32xbf16> to vector<8x8x32xbf16>
    %4 = vector.extract_strided_slice %0 {offsets = [0, 3, 0], sizes = [8, 8, 32], strides = [1, 1, 1]} : vector<8x12x32xbf16> to vector<8x8x32xbf16>
    %5 = vector.extract_strided_slice %0 {offsets = [0, 4, 0], sizes = [8, 8, 32], strides = [1, 1, 1]} : vector<8x12x32xbf16> to vector<8x8x32xbf16>
    %6 = tpu.concatenate %1, %2, %3, %4, %5 in 2 : vector<8x8x32xbf16>, vector<8x8x32xbf16>, vector<8x8x32xbf16>, vector<8x8x32xbf16>, vector<8x8x32xbf16> -> vector<8x8x160xbf16>
    %7 = vector.shape_cast %6 : vector<8x8x160xbf16> to vector<64x160xbf16>
    %c0_2 = arith.constant 0 : index
    %c0_3 = arith.constant 0 : index
    %8 = vector.load %arg3[%c0_2, %c0_3] : memref<160x48xbf16, #tpu.memory_space<vmem>>, vector<160x48xbf16>
    %cst = arith.constant dense<0.000000e+00> : vector<64x48xf32>
    %9 = tpu.matmul %7, %8, %cst {dimension_numbers = #tpu.dot_dimension_numbers<[1], [0], [0], [1], [0, 0, 1, 1], [], []>} : vector<64x160xbf16>, vector<160x48xbf16>, vector<64x48xf32> -> vector<64x48xf32>
    %10 = vector.shape_cast %9 : vector<64x48xf32> to vector<8x8x48xf32>
    %c0_4 = arith.constant 0 : index
    %c0_5 = arith.constant 0 : index
    %11 = vector.load %arg2[%c0_4, %c0_5] : memref<8x48xf32, #tpu.memory_space<vmem>>, vector<8x48xf32>
    %12 = vector.shape_cast %11 : vector<8x48xf32> to vector<1x8x48xf32>
    %13 = vector.broadcast %12 : vector<1x8x48xf32> to vector<8x8x48xf32>
    %14 = arith.addf %10, %13 : vector<8x8x48xf32>
    %cst_6 = arith.constant dense<0xFF800000> : vector<8x48xf32>
    %15 = vector.multi_reduction <maximumf>, %14, %cst_6 [1] : vector<8x8x48xf32> to vector<8x48xf32>
    %c0_7 = arith.constant 0 : index
    %c0_8 = arith.constant 0 : index
    %16 = vector.load %arg4[%c0_7, %c0_8] : memref<1x48xf32, #tpu.memory_space<vmem>>, vector<1x48xf32>
    %17 = vector.broadcast %16 : vector<1x48xf32> to vector<8x48xf32>
    %18 = arith.addf %15, %17 : vector<8x48xf32>
    %cst_9 = arith.constant 0.000000e+00 : f32
    %19 = vector.broadcast %cst_9 : f32 to vector<8x48xf32>
    %20 = arith.maximumf %18, %19 : vector<8x48xf32>
    %c0_10 = arith.constant 0 : index
    %c0_11 = arith.constant 0 : index
    %21 = vector.load %arg5[%c0_10, %c0_11] : memref<48x8xf32, #tpu.memory_space<vmem>>, vector<48x8xf32>
    %cst_12 = arith.constant dense<0.000000e+00> : vector<8x8xf32>
    %22 = tpu.matmul %20, %21, %cst_12 {dimension_numbers = #tpu.dot_dimension_numbers<[1], [0], [0], [1], [0, 0, 1, 1], [], []>} : vector<8x48xf32>, vector<48x8xf32>, vector<8x8xf32> -> vector<8x8xf32>
    %c0_13 = arith.constant 0 : index
    %c0_14 = arith.constant 0 : index
    %23 = vector.load %arg6[%c0_13, %c0_14] : memref<1x8xf32, #tpu.memory_space<vmem>>, vector<1x8xf32>
    %24 = vector.broadcast %23 : vector<1x8xf32> to vector<8x8xf32>
    %25 = arith.addf %22, %24 : vector<8x8xf32>
    %cst_15 = arith.constant dense<0xFF800000> : vector<8xf32>
    %26 = vector.multi_reduction <maximumf>, %25, %cst_15 [1] : vector<8x8xf32> to vector<8xf32>
    %27 = vector.shape_cast %26 : vector<8xf32> to vector<8x1xf32>
    %28 = vector.broadcast %27 : vector<8x1xf32> to vector<8x8xf32>
    %29 = arith.subf %25, %28 : vector<8x8xf32>
    %30 = math.exp %29 : vector<8x8xf32>
    %cst_16 = arith.constant dense<0.000000e+00> : vector<8xf32>
    %31 = vector.multi_reduction <add>, %30, %cst_16 [1] : vector<8x8xf32> to vector<8xf32>
    %32 = vector.shape_cast %31 : vector<8xf32> to vector<8x1xf32>
    %33 = math.log %32 : vector<8x1xf32>
    %34 = vector.broadcast %33 : vector<8x1xf32> to vector<8x8xf32>
    %35 = arith.subf %29, %34 : vector<8x8xf32>
    %c0_17 = arith.constant 0 : index
    %c0_18 = arith.constant 0 : index
    %36 = vector.load %arg7[%c0_17, %c0_18] : memref<8x8xf32, #tpu.memory_space<vmem>>, vector<8x8xf32>
    tpu.vector_store %arg7[%c0_17, %c0_18], %35 {strides = array<i32>} : memref<8x8xf32, #tpu.memory_space<vmem>>, vector<8x8xf32>,
    return
  }
  func.func @transform_0(%arg0: i32) -> (i32, i32, i32) {
    %c0_i32 = arith.constant 0 : i32
    %c0_i32_0 = arith.constant 0 : i32
    %c0_i32_1 = arith.constant 0 : i32
    return %arg0, %c0_i32, %c0_i32_0 : i32, i32, i32
  }
  func.func @transform_1(%arg0: i32) -> (i32, i32) {
    %c0_i32 = arith.constant 0 : i32
    %c0_i32_0 = arith.constant 0 : i32
    %c0_i32_1 = arith.constant 0 : i32
    return %c0_i32, %c0_i32_0 : i32, i32
  }
  func.func @transform_2(%arg0: i32) -> (i32, i32) {
    %c0_i32 = arith.constant 0 : i32
    %c0_i32_0 = arith.constant 0 : i32
    %c0_i32_1 = arith.constant 0 : i32
    return %c0_i32, %c0_i32_0 : i32, i32
  }
  func.func @transform_3(%arg0: i32) -> (i32, i32) {
    %c0_i32 = arith.constant 0 : i32
    %c0_i32_0 = arith.constant 0 : i32
    %c0_i32_1 = arith.constant 0 : i32
    return %c0_i32, %c0_i32_0 : i32, i32
  }
  func.func @transform_4(%arg0: i32) -> (i32, i32) {
    %c0_i32 = arith.constant 0 : i32
    %c0_i32_0 = arith.constant 0 : i32
    %c0_i32_1 = arith.constant 0 : i32
    return %c0_i32, %c0_i32_0 : i32, i32
  }
  func.func @transform_5(%arg0: i32) -> (i32, i32) {
    %c0_i32 = arith.constant 0 : i32
    %c0_i32_0 = arith.constant 0 : i32
    %c0_i32_1 = arith.constant 0 : i32
    return %c0_i32, %c0_i32_0 : i32, i32
  }
  func.func @transform_6(%arg0: i32) -> (i32, i32) {
    %c0_i32 = arith.constant 0 : i32
    %c0_i32_0 = arith.constant 0 : i32
    return %arg0, %c0_i32 : i32, i32
  }
}

</mosaic_0001>

<bundles_post_ra>
// kernel: textcnn_forward.1
= control target key start
LH: loop header
LB: loop body
LE: loop exit
PB: predicated region body
PF: predicated region fallthrough
CT: control target
= control target key end

     0   :  { %v810_v3 = vmov 0   ;;  %s811_s17 = smov 64   ;;  %s812_s20 = smov 32   ;;  %vm224_vm0 = vcmask 261120   ;;  %vm249_vm1 = vcmask 523264   ;;  %vm266_vm2 = vcmask 785408   ;;  %s1158_s0 = inlined_call_operand.vmem [shape: bf16[8,12,32], index: 0, kind: input, shape index: {}]   ;;  %s1159_s2 = inlined_call_operand.vmem [shape: bf16[160,48], index: 2, kind: input, shape index: {}]   ;;  %s1160_s4 = inlined_call_operand.vmem [shape: f32[48,8], index: 4, kind: input, shape index: {}]   ;;  %s1161_s1 = inlined_call_operand.vmem [shape: f32[8,48], index: 1, kind: input, shape index: {}]   ;;  %s1162_s3 = inlined_call_operand.vmem [shape: f32[1,48], index: 3, kind: input, shape index: {}]   ;;  %s1163_s5 = inlined_call_operand.vmem [shape: f32[1,8], index: 5, kind: input, shape index: {}]   ;;  %s1164_s6 = inlined_call_operand.vmem [shape: f32[8,8], index: 6, kind: output, shape index: {}]  }
   0x1   :  { %v855_v0 = vld [vmem:[%s1158_s0] sm:$0xf]  ;;  %v25_v1 = vld [vmem:[%s1158_s0 + $0x4] sm:$0x3]  ;;  %v863_v2 = vld [vmem:[%s1158_s0 + $0x8] sm:$0xf]  ;;  %411 = vmatprep.subr.bf16.mxu0 %v810_v3  ;;  %761 = vmatprep.subr.bf16.mxu1 %v810_v3 }
   0x2   :  { %v868_v4 = vcombine.low %v855_v0, %v25_v1  ;;  %v27_v5 = vld [vmem:[%s1158_s0 + $0xc] sm:$0x3]  ;;  %v876_v6 = vld [vmem:[%s1158_s0 + $0x18] sm:$0xf]  ;;  %v796_v7 = vld [vmem:[%s1159_s2] sm:$0xff]   ;;  %s813_s7 = smov 96  }
   0x3   :  { %v882_v8 = vcombine.low %v863_v2, %v27_v5  ;;  %v31_v9 = vld [vmem:[%s1158_s0 + $0x1c] sm:$0x3]  ;;  %v890_v10 = vld [vmem:[%s1158_s0 + $0x10] sm:$0xf]  ;;  %v29_v11 = vld [vmem:[%s1158_s0 + $0x14] sm:$0x3]  ;;  %412 = vmatpush1.bf16.msra.mxu0 %v796_v7  ;;  %771 = vmatpush1.bf16.msra.mxu1 %v796_v7 }
   0x4   :  { %v152_v12 = vrot.slane %v868_v4, 1  ;;  %v81_v13 = vshrl.u32 %v868_v4, 16  ;;  %v83_v14 = vshll.u32 %v868_v4, 16  ;;  %v899_v15 = vcombine.low %v876_v6, %v31_v9  ;;  %v797_v16 = vld [vmem:[%s1159_s2 + $0x8] sm:$0xff]   ;;  %413 = vmatprep.subr.bf16.mxu0 %v810_v3  ;;  %762 = vmatprep.subr.bf16.mxu1 %v810_v3  ;;  %v798_v27 = vld [vmem:[%s1159_s2 + $0x10] sm:$0xff]   ;;  %v799_v39 = vld [vmem:[%s1159_s2 + $0x18] sm:$0xff]  }
   0x5   :  { %v88_v17 = vshrl.u32 %v882_v8, 16  ;;  %v90_v18 = vshll.u32 %v882_v8, 16  ;;  %v153_v19 = vrot.slane %v882_v8, 1  ;;  %v912_v22 = vcombine.low %v890_v10, %v29_v11  ;;  %v926_v35 = vld [vmem:[%s1158_s0 + $0x28] sm:$0xf]  ;;  %v800_v46 = vld [vmem:[%s1159_s2 + $0x20] sm:$0xff]  }
   0x6   :  { %160 = vrot.lane.b32.xlu1 %v152_v12, %s811_s17  ;;  %v85_v20 = vrot.slane %v83_v14, 1  ;;  %v104_v21 = vshll.u32 %v899_v15, 16  ;;  %v176_v28 = vrot.slane %v81_v13, 1  ;;  %v102_v29 = vshrl.u32 %v899_v15, 16  ;;  %v35_v36 = vld [vmem:[%s1158_s0 + $0x2c] sm:$0x3] }
   0x7   :  { %v179_v23 = vrot.slane %v88_v17, 1  ;;  %v180_v24 = vrot.slane %v90_v18, 2  ;;  %v92_v25 = vrot.slane %v90_v18, 1  ;;  %414 = vmatpush1.bf16.msra.mxu0 %v797_v16  ;;  %772 = vmatpush1.bf16.msra.mxu1 %v797_v16  ;;  %v177_v30 = vrot.slane %v83_v14, 2  ;;  %v934_v37 = vld [vmem:[%s1158_s0 + $0x20] sm:$0xf] }
   0x8   :  { %v86_v26 = vor.u32 %v85_v20, %v81_v13  ;;  %415 = vmatprep.subr.bf16.mxu0 %v810_v3  ;;  %763 = vmatprep.subr.bf16.mxu1 %v810_v3  ;;  %v106_v33 = vrot.slane %v104_v21, 1  ;;  %v97_v34 = vshll.u32 %v912_v22, 16  ;;  %v33_v38 = vld [vmem:[%s1158_s0 + $0x24] sm:$0x3]  ;;  %v95_v40 = vshrl.u32 %v912_v22, 16  ;;  %v801_v59 = vld [vmem:[%s1159_s2 + $0x28] sm:$0xff]  }
   0x9   :  { %v181_v31 = vor.u32 %v180_v24, %v179_v23  ;;  %v93_v32 = vor.u32 %v92_v25, %v88_v17  ;;  %v178_v42 = vor.u32 %v177_v30, %v176_v28  ;;  %v947_v44 = vcombine.low %v926_v35, %v35_v36  ;;  %v960_v49 = vld [vmem:[%s1158_s0 + $0x38] sm:$0xf]  ;;  %v39_v50 = vld [vmem:[%s1158_s0 + $0x3c] sm:$0x3]  ;;  %v973_v57 = vld [vmem:[%s1158_s0 + $0x30] sm:$0xf] }
   0xa   :  { %162 = vrot.lane.b32.xlu1 %v153_v19, %s811_s17  ;;  %136 = vrot.lane.b32.xlu0 %v86_v26, %s812_s20  ;;  %v107_v41 = vor.u32 %v106_v33, %v102_v29  ;;  %v99_v43 = vrot.slane %v97_v34, 1  ;;  %v951_v45 = vcombine.low %v934_v37, %v33_v38  ;;  %v155_v47 = vrot.slane %v899_v15, 1  ;;  %v37_v58 = vld [vmem:[%s1158_s0 + $0x34] sm:$0x3]  ;;  %v803_v19 = vld [vmem:[%s1159_s2 + $0x38] sm:$0xff]  }
   0xb   :  { %416 = vmatpush1.bf16.msra.mxu0 %v798_v27  ;;  %773 = vmatpush1.bf16.msra.mxu1 %v798_v27  ;;  %v185_v48 = vrot.slane %v102_v29, 1  ;;  %v186_v52 = vrot.slane %v104_v21, 2  ;;  %v118_v53 = vshll.u32 %v947_v44, 16  ;;  %v154_v54 = vrot.slane %v912_v22, 1  ;;  %v802_v13 = vld [vmem:[%s1159_s2 + $0x30] sm:$0xff]   ;;  %v804_v27 = vld [vmem:[%s1159_s2 + $0x40] sm:$0xff]  }
   0xc   :  { %417 = vmatprep.subr.bf16.mxu0 %v810_v3  ;;  %764 = vmatprep.subr.bf16.mxu1 %v810_v3  ;;  %v100_v51 = vor.u32 %v99_v43, %v95_v40  ;;  %v182_v55 = vrot.slane %v95_v40, 1  ;;  %v183_v56 = vrot.slane %v97_v34, 2  ;;  %v116_v60 = vshrl.u32 %v947_v44, 16  ;;  %v805_v36 = vld [vmem:[%s1159_s2 + $0x48] sm:$0xff]  }
   0xd   :  { %v111_v61 = vshll.u32 %v951_v45, 16  ;;  %v187_v62 = vor.u32 %v186_v52, %v185_v48  ;;  %v120_v63 = vrot.slane %v118_v53, 1  ;;  %v990_v1 = vcombine.low %v960_v49, %v39_v50 }
   0xe   :  { %202 = vrot.lane.b32.xlu1 %v181_v31, %s813_s7  ;;  %138 = vrot.lane.b32.xlu0 %v93_v32, %s812_s20  ;;  %v216_v5 = vrot.slane %v868_v4, 2  ;;  %v217_v7 = vrot.slane %v882_v8, 2  ;;  %v218_v9 = vrot.slane %v912_v22, 2  ;;  %v219_v11 = vrot.slane %v899_v15, 2 }
   0xf   :  { %418 = vmatpush1.bf16.msra.mxu0 %v799_v39  ;;  %774 = vmatpush1.bf16.msra.mxu1 %v799_v39  ;;  %v998_v12 = vcombine.low %v973_v57, %v37_v58  ;;  %v184_v14 = vor.u32 %v183_v56, %v182_v55  ;;  %v121_v15 = vor.u32 %v120_v63, %v116_v60  ;;  %v109_v16 = vshrl.u32 %v951_v45, 16 }
  0x10   :  { %419 = vmatprep.subr.bf16.mxu0 %v810_v3  ;;  %765 = vmatprep.subr.bf16.mxu1 %v810_v3  ;;  %v706_v4 = vcombine.low %v216_v5, %v217_v7  ;;  %v1004_v8 = vcombine.low %v218_v9, %v219_v11  ;;  %v113_v17 = vrot.slane %v111_v61, 1  ;;  %v132_v18 = vshll.u32 %v990_v1, 16 }
  0x11   :  { %v157_v20 = vrot.slane %v947_v44, 1  ;;  %v130_v22 = vshrl.u32 %v990_v1, 16  ;;  %v125_v24 = vshll.u32 %v998_v12, 16  ;;  %v220_v25 = vrot.slane %v951_v45, 2 }
  0x12   :  { %142 = vrot.lane.b32.xlu1 %v107_v41, %s812_s20  ;;  %200 = vrot.lane.b32.xlu0 %v178_v42, %s813_s7  ;;  %v114_v21 = vor.u32 %v113_v17, %v109_v16  ;;  %v134_v23 = vrot.slane %v132_v18, 1  ;;  %v221_v26 = vrot.slane %v947_v44, 2  ;;  %v156_v28 = vrot.slane %v951_v45, 1 }
  0x13   :  { %420 = vmatpush1.bf16.msra.mxu0 %v800_v46  ;;  %775 = vmatpush1.bf16.msra.mxu1 %v800_v46  ;;  %v191_v29 = vrot.slane %v116_v60, 1  ;;  %v192_v32 = vrot.slane %v118_v53, 2  ;;  %v123_v33 = vshrl.u32 %v998_v12, 16  ;;  %v127_v34 = vrot.slane %v125_v24, 1 }
  0x14   :  { %421 = vmatprep.subr.bf16.mxu0 %v810_v3  ;;  %766 = vmatprep.subr.bf16.mxu1 %v810_v3  ;;  %v1031_v30 = vcombine.low %v220_v25, %v221_v26  ;;  %v135_v31 = vor.u32 %v134_v23, %v130_v22  ;;  %v188_v40 = vrot.slane %v109_v16, 1  ;;  %v189_v41 = vrot.slane %v111_v61, 2 }
  0x15   :  { %723 = vmatprep.mubr.msk.bf16.mxu0 %vm224_vm0, %v706_v4  ;;  %v193_v38 = vor.u32 %v192_v32, %v191_v29  ;;  %v128_v39 = vor.u32 %v127_v34, %v123_v33  ;;  %v222_v42 = vrot.slane %v998_v12, 2  ;;  %v223_v43 = vrot.slane %v990_v1, 2 }
  0x16   :  { %166 = vrot.lane.b32.xlu1 %v155_v47, %s811_s17  ;;  %140 = vrot.lane.b32.xlu0 %v100_v51, %s812_s20  ;;  %v159_v46 = vrot.slane %v990_v1, 1  ;;  %v190_v47 = vor.u32 %v189_v41, %v188_v40  ;;  %v197_v48 = vrot.slane %v130_v22, 1  ;;  %v198_v50 = vrot.slane %v132_v18, 2 }
  0x17   :  { %422 = vmatpush1.bf16.msra.mxu0 %v801_v59  ;;  %776 = vmatpush1.bf16.msra.mxu1 %v801_v59  ;;  %v712_v44 = vcombine.low %v222_v42, %v223_v43  ;;  %v158_v45 = vrot.slane %v998_v12, 1  ;;  %v194_v51 = vrot.slane %v123_v33, 1  ;;  %v195_v52 = vrot.slane %v125_v24, 2 }
  0x18   :  { %423 = vmatprep.subr.bf16.mxu0 %v810_v3  ;;  %767 = vmatprep.subr.bf16.mxu1 %v810_v3  ;;  %vm815_vm3 = vmmov 0   ;;  %vm485_vm4 = vcmask 392192   ;;  %vm587_vm5 = vcmask 1041409   ;;  %vm590_vm6 = vcmask 1042434  }
  0x19   :  { %726 = vmatprep.mubr.msk.bf16.mxu1 %vm224_vm0, %v712_v44  ;;  %v196_v53 = vor.u32 %v195_v52, %v194_v51  ;;  %v565_v44 = vld [vmem:[%s1160_s4] sm:$0xff]  ;;  %v816_v52 = vmov 0.0   ;;  %vm593_vm7 = vcmask 1043459   ;;  %vm596_vm8 = vcmask 1044484  }
  0x1a   :  { %206 = vrot.lane.b32.xlu1 %v187_v62, %s813_s7  ;;  %164 = vrot.lane.b32.xlu0 %v154_v54, %s811_s17  ;;  %vm599_vm9 = vcmask 1045509   ;;  %vm602_vm10 = vcmask 1046534   ;;  %vm605_vm11 = vcmask 1047559   ;;  %vm679_vm12 = vcmask 64512  }
  0x1b   :  { %424 = vmatpush1.bf16.msra.mxu0 %v802_v13  ;;  %777 = vmatpush1.bf16.msra.mxu1 %v802_v13 }
  0x1c   :  { %425 = vmatprep.subr.bf16.mxu0 %v810_v3  ;;  %768 = vmatprep.subr.bf16.mxu1 %v810_v3 }
  0x1e   :  { %146 = vrot.lane.b32.xlu1 %v121_v15, %s812_s20  ;;  %204 = vrot.lane.b32.xlu0 %v184_v14, %s813_s7 }
  0x1f   :  { %426 = vmatpush1.bf16.msra.mxu0 %v803_v19  ;;  %778 = vmatpush1.bf16.msra.mxu1 %v803_v19 }
  0x20   :  { %427 = vmatprep.subr.bf16.mxu0 %v810_v3  ;;  %769 = vmatprep.subr.bf16.mxu1 %v810_v3 }
  0x22   :  { %170 = vrot.lane.b32.xlu1 %v157_v20, %s811_s17  ;;  %144 = vrot.lane.b32.xlu0 %v114_v21, %s812_s20 }
  0x23   :  { %428 = vmatpush1.bf16.msra.mxu0 %v804_v27  ;;  %779 = vmatpush1.bf16.msra.mxu1 %v804_v27 }
  0x24   :  { %429 = vmatprep.subr.bf16.mxu0 %v810_v3  ;;  %770 = vmatprep.subr.bf16.mxu1 %v810_v3  ;;  %v199_v3 = vor.u32 %v198_v50, %v197_v48  ;;  %v568_v48 = vld [vmem:[%s1160_s4 + $0x18] sm:$0xff] }
  0x26   :  { %150 = vrot.lane.b32.xlu1 %v135_v31, %s812_s20  ;;  %168 = vrot.lane.b32.xlu0 %v156_v28, %s811_s17 }
  0x27   :  { %430 = vmatpush1.bf16.msra.mxu0 %v805_v36  ;;  %780 = vmatpush1.bf16.msra.mxu1 %v805_v36 }
  0x2a   :  { %210 = vrot.lane.b32.xlu1 %v193_v38, %s813_s7  ;;  %148 = vrot.lane.b32.xlu0 %v128_v39, %s812_s20 }
  0x2e   :  { %174 = vrot.lane.b32.xlu1 %v159_v46, %s811_s17  ;;  %208 = vrot.lane.b32.xlu0 %v190_v47, %s813_s7  ;;  %v814_v46 = vmov 0.0|0.0   ;;  %v567_v47 = vld [vmem:[%s1160_s4 + $0x10] sm:$0xff] }
  0x2f   :  { %752 = vmatprep.subr.bf16.mxu1 %v814_v46  ;;  %v756_v50 = vpack.c.bf16 %v568_v48, %v567_v47 }
  0x32   :  { %214 = vrot.lane.b32.xlu1 %v199_v3, %s813_s7  ;;  %172 = vrot.lane.b32.xlu0 %v158_v45, %s811_s17  ;;  %v569_v3 = vld [vmem:[%s1160_s4 + $0x20] sm:$0xff]  ;;  %v570_v45 = vld [vmem:[%s1160_s4 + $0x28] sm:$0xff] }
  0x33   :  { %v759_v51 = vpack.c.bf16 %v570_v45, %v569_v3 }
  0x36   :  { %212 = vrot.lane.b32.xlu0 %v196_v53, %s813_s7  ;;  %v1117_v53 = vld [vmem:[%s1161_s1] sm:$0xff] }
  0x78   :  { %v161_v54 = vpop.permute.xlu1 %160 }
  0x7c   :  { %v163_v55 = vpop.permute.xlu1 %162  ;;  %v137_v56 = vpop.permute.xlu0 %136 }
  0x7d   :  { %v227_v60 = vsel %vm224_vm0, %v855_v0, %v137_v56 }
  0x7e   :  { %v251_v1 = vsel %vm249_vm1, %v227_v60, %v161_v54 }
  0x80   :  { %v203_v58 = vpop.permute.xlu1 %202  ;;  %v139_v59 = vpop.permute.xlu0 %138 }
  0x81   :  { %v230_v61 = vsel %vm224_vm0, %v863_v2, %v139_v59 }
  0x82   :  { %v253_v62 = vsel %vm249_vm1, %v230_v61, %v163_v55 }
  0x83   :  { %v270_v7 = vsel %vm266_vm2, %v253_v62, %v203_v58 }
  0x84   :  { %v143_v63 = vpop.permute.xlu1 %142  ;;  %v201_v5 = vpop.permute.xlu0 %200 }
  0x85   :  { %v268_v9 = vsel %vm266_vm2, %v251_v1, %v201_v5  ;;  %v236_v14 = vsel %vm224_vm0, %v876_v6, %v143_v63 }
  0x86   :  { %v705_v11 = vcombine.low %v268_v9, %v270_v7 }
  0x88   :  { %v167_v12 = vpop.permute.xlu1 %166  ;;  %444 = vmatmul.mubr.bf16.vlgmr.msra.gmra.mrb[0].mxu0 %v705_v11  ;;  %v141_v13 = vpop.permute.xlu0 %140 }
  0x89   :  { %724 = vmatprep.mubr.msk.bf16.mxu0 %vm224_vm0, %v1004_v8  ;;  %v233_v4 = vsel %vm224_vm0, %v890_v10, %v141_v13  ;;  %v257_v15 = vsel %vm249_vm1, %v236_v14, %v167_v12 }
  0x8c   :  { %v207_v0 = vpop.permute.xlu1 %206  ;;  %v165_v2 = vpop.permute.xlu0 %164 }
  0x8d   :  { %v255_v16 = vsel %vm249_vm1, %v233_v4, %v165_v2  ;;  %v274_v19 = vsel %vm266_vm2, %v257_v15, %v207_v0 }
  0x90   :  { %v147_v17 = vpop.permute.xlu1 %146  ;;  %v205_v18 = vpop.permute.xlu0 %204 }
  0x91   :  { %v272_v20 = vsel %vm266_vm2, %v255_v16, %v205_v18  ;;  %v242_v25 = vsel %vm224_vm0, %v926_v35, %v147_v17  ;;  %v1127_v18 = vld [vmem:[%s1162_s3] ss:$0 sm:$0xff] }
  0x92   :  { %v707_v21 = vcombine.low %v272_v20, %v274_v19 }
  0x94   :  { %v171_v8 = vpop.permute.xlu1 %170  ;;  %452 = vmatmul.mubr.bf16.gmra.mrb[4].mxu0 %v707_v21  ;;  %v145_v22 = vpop.permute.xlu0 %144 }
  0x95   :  { %725 = vmatprep.mubr.msk.bf16.mxu0 %vm224_vm0, %v1031_v30  ;;  %v239_v26 = vsel %vm224_vm0, %v934_v37, %v145_v22  ;;  %v261_v27 = vsel %vm249_vm1, %v242_v25, %v171_v8 }
  0x98   :  { %v151_v6 = vpop.permute.xlu1 %150  ;;  %v169_v23 = vpop.permute.xlu0 %168 }
  0x99   :  { %v259_v28 = vsel %vm249_vm1, %v239_v26, %v169_v23  ;;  %v248_v35 = vsel %vm224_vm0, %v960_v49, %v151_v6  ;;  %v566_v49 = vld [vmem:[%s1160_s4 + $0x8] sm:$0xff] }
  0x9c   :  { %v211_v10 = vpop.permute.xlu1 %210  ;;  %v149_v24 = vpop.permute.xlu0 %148 }
  0x9d   :  { %v278_v32 = vsel %vm266_vm2, %v261_v27, %v211_v10  ;;  %v245_v37 = vsel %vm224_vm0, %v973_v57, %v149_v24  ;;  %v753_v57 = vpack.c.bf16 %v566_v49, %v565_v44 }
  0xa0   :  { %v175_v29 = vpop.permute.xlu1 %174  ;;  %v209_v31 = vpop.permute.xlu0 %208 }
  0xa1   :  { %v276_v30 = vsel %vm266_vm2, %v259_v28, %v209_v31  ;;  %v265_v38 = vsel %vm249_vm1, %v248_v35, %v175_v29 }
  0xa2   :  { %v709_v33 = vcombine.low %v276_v30, %v278_v32 }
  0xa4   :  { %460 = vmatmul.mubr.bf16.gmra.mrb[8].mxu0 %v709_v33  ;;  %v173_v34 = vpop.permute.xlu0 %172  ;;  %v215_v36 = vpop.permute.xlu1 %214 }
  0xa5   :  { %v263_v39 = vsel %vm249_vm1, %v245_v37, %v173_v34  ;;  %v282_v41 = vsel %vm266_vm2, %v265_v38, %v215_v36 }
  0xa8   :  { %v213_v40 = vpop.permute.xlu0 %212 }
  0xa9   :  { %v280_v42 = vsel %vm266_vm2, %v263_v39, %v213_v40 }
  0xaa   :  { %v711_v43 = vcombine.low %v280_v42, %v282_v41 }
  0xac   :  { %468 = vmatmul.mubr.bf16.vlgmr.msra.gmra.mrb[0].mxu1 %v711_v43 }
  0xad   :  { %754 = vmatpush3.bf16.msra.mxu1 %v753_v57  ;;  %749 = vmatprep.mubr.msk.f32.mxu1 %vm815_vm3, %v816_v52 }
  0xae   :  { %755 = vmatprep.subr.bf16.mxu1 %v814_v46 }
  0xb1   :  { %757 = vmatpush3.bf16.msra.mxu1 %v756_v50 }
  0xb2   :  { %758 = vmatprep.subr.bf16.mxu1 %v814_v46 }
  0xb5   :  { %760 = vmatpush3.bf16.msra.mxu1 %v759_v51 }
 0x15b   :  { %v445_v54 = vpop.f32.mrb[0].mxu0 }
 0x15c   :  { %v477_v55 = vadd.f32 %v1117_v53, %v445_v54  ;;  %v447_v56 = vpop.f32.mrb[1].mxu0 }
 0x15d   :  { %v448_v58 = vpop.f32.mrb[2].mxu0 }
 0x15e   :  { %v486_v59 = vsel %vm485_vm4, %v477_v55, -inf  ;;  %v478_v60 = vadd.f32 %v1117_v53, %v448_v58  ;;  %v450_v61 = vpop.f32.mrb[3].mxu0 }
 0x15f   :  { %v487_v62 = vrot.slane %v486_v59, 4 }
 0x160   :  { %v493_v63 = vsel %vm485_vm4, %v478_v60, -inf }
 0x161   :  { %v488_v1 = vmax.f32 %v486_v59, %v487_v62  ;;  %v494_v5 = vrot.slane %v493_v63, 4 }
 0x163   :  { %v489_v7 = vrot.slane %v488_v1, 2  ;;  %v495_v9 = vmax.f32 %v493_v63, %v494_v5 }
 0x165   :  { %v490_v11 = vmax.f32 %v488_v1, %v489_v7  ;;  %v496_v12 = vrot.slane %v495_v9, 2 }
 0x167   :  { %v491_v13 = vrot.slane %v490_v11, 1  ;;  %v497_v0 = vmax.f32 %v495_v9, %v496_v12  ;;  %v453_v2 = vpop.f32.mrb[4].mxu0 }
 0x168   :  { %v479_v14 = vadd.f32 %v1117_v53, %v453_v2  ;;  %v455_v4 = vpop.f32.mrb[5].mxu0 }
 0x169   :  { %v492_v15 = vmax.f32 %v490_v11, %v491_v13  ;;  %v498_v16 = vrot.slane %v497_v0, 1  ;;  %v456_v17 = vpop.f32.mrb[6].mxu0 }
 0x16a   :  { %v500_v19 = vsel %vm485_vm4, %v479_v14, -inf  ;;  %v480_v20 = vadd.f32 %v1117_v53, %v456_v17  ;;  %v458_v21 = vpop.f32.mrb[7].mxu0 }
 0x16b   :  { %v499_v8 = vmax.f32 %v497_v0, %v498_v16  ;;  %v501_v22 = vrot.slane %v500_v19, 4  ;;  %v549_v23 = vadd.f32 %v1127_v18, %v492_v15 }
 0x16c   :  { %v507_v6 = vsel %vm485_vm4, %v480_v20, -inf }
 0x16d   :  { %v550_v10 = vadd.f32 %v1127_v18, %v499_v8  ;;  %v502_v24 = vmax.f32 %v500_v19, %v501_v22  ;;  %v508_v25 = vrot.slane %v507_v6, 4  ;;  %v557_v29 = vmax.f32 %v549_v23, 0.0 }
 0x16f   :  { %v558_v26 = vmax.f32 %v550_v10, 0.0  ;;  %v503_v27 = vrot.slane %v502_v24, 2  ;;  %v509_v28 = vmax.f32 %v507_v6, %v508_v25 }
 0x171   :  { %v586_v31 = vrot.slane %v558_v26, 7  ;;  %v504_v32 = vmax.f32 %v502_v24, %v503_v27  ;;  %v510_v30 = vrot.slane %v509_v28, 2 }
 0x173   :  { %v588_v33 = vsel %vm587_vm5, %v586_v31, %v557_v29  ;;  %v505_v34 = vrot.slane %v504_v32, 1  ;;  %v511_v36 = vmax.f32 %v509_v28, %v510_v30 }
 0x175   :  { %v506_v35 = vmax.f32 %v504_v32, %v505_v34  ;;  %v512_v37 = vrot.slane %v511_v36, 1 }
 0x177   :  { %v551_v38 = vadd.f32 %v1127_v18, %v506_v35  ;;  %v513_v39 = vmax.f32 %v511_v36, %v512_v37  ;;  %v461_v40 = vpop.f32.mrb[8].mxu0 }
 0x178   :  { %v481_v41 = vadd.f32 %v1117_v53, %v461_v40  ;;  %v463_v42 = vpop.f32.mrb[9].mxu0  ;;  %v728_v40 = vld [vmem:[%s1163_s5] ss:$0 sm:$0xff] }
 0x179   :  { %v559_v43 = vmax.f32 %v551_v38, 0.0  ;;  %v552_v44 = vadd.f32 %v1127_v18, %v513_v39  ;;  %v464_v49 = vpop.f32.mrb[10].mxu0 }
 0x17a   :  { %v514_v57 = vsel %vm485_vm4, %v481_v41, -inf  ;;  %v482_v46 = vadd.f32 %v1117_v53, %v464_v49  ;;  %v466_v47 = vpop.f32.mrb[11].mxu0 }
 0x17b   :  { %v589_v48 = vrot.slane %v559_v43, 6  ;;  %v560_v50 = vmax.f32 %v552_v44, 0.0  ;;  %v515_v3 = vrot.slane %v514_v57, 4 }
 0x17c   :  { %v521_v45 = vsel %vm485_vm4, %v482_v46, -inf }
 0x17d   :  { %v591_v51 = vsel %vm590_vm6, %v589_v48, %v588_v33  ;;  %v592_v52 = vrot.slane %v560_v50, 5  ;;  %v516_v54 = vmax.f32 %v514_v57, %v515_v3  ;;  %v522_v55 = vrot.slane %v521_v45, 4 }
 0x17f   :  { %v517_v56 = vrot.slane %v516_v54, 2  ;;  %v523_v58 = vmax.f32 %v521_v45, %v522_v55  ;;  %v469_v59 = vpop.f32.mrb[0].mxu1  ;;  %v594_v60 = vsel %vm593_vm7, %v592_v52, %v591_v51 }
 0x180   :  { %v483_v61 = vadd.f32 %v1117_v53, %v469_v59  ;;  %v471_v62 = vpop.f32.mrb[1].mxu1 }
 0x181   :  { %v518_v63 = vmax.f32 %v516_v54, %v517_v56  ;;  %v524_v1 = vrot.slane %v523_v58, 2  ;;  %v472_v5 = vpop.f32.mrb[2].mxu1 }
 0x182   :  { %v528_v7 = vsel %vm485_vm4, %v483_v61, -inf  ;;  %v484_v9 = vadd.f32 %v1117_v53, %v472_v5  ;;  %v474_v11 = vpop.f32.mrb[3].mxu1 }
 0x183   :  { %v519_v12 = vrot.slane %v518_v63, 1  ;;  %v525_v13 = vmax.f32 %v523_v58, %v524_v1  ;;  %v529_v0 = vrot.slane %v528_v7, 4 }
 0x184   :  { %v535_v2 = vsel %vm485_vm4, %v484_v9, -inf }
 0x185   :  { %v520_v14 = vmax.f32 %v518_v63, %v519_v12  ;;  %v526_v4 = vrot.slane %v525_v13, 1  ;;  %v530_v15 = vmax.f32 %v528_v7, %v529_v0  ;;  %v536_v16 = vrot.slane %v535_v2, 4 }
 0x187   :  { %v553_v17 = vadd.f32 %v1127_v18, %v520_v14  ;;  %v527_v19 = vmax.f32 %v525_v13, %v526_v4  ;;  %v531_v20 = vrot.slane %v530_v15, 2  ;;  %v537_v21 = vmax.f32 %v535_v2, %v536_v16 }
 0x189   :  { %v561_v8 = vmax.f32 %v553_v17, 0.0  ;;  %v554_v22 = vadd.f32 %v1127_v18, %v527_v19  ;;  %v532_v6 = vmax.f32 %v530_v15, %v531_v20  ;;  %v538_v53 = vrot.slane %v537_v21, 2 }
 0x18b   :  { %v595_v23 = vrot.slane %v561_v8, 4  ;;  %v562_v10 = vmax.f32 %v554_v22, 0.0  ;;  %v533_v24 = vrot.slane %v532_v6, 1  ;;  %v539_v25 = vmax.f32 %v537_v21, %v538_v53 }
 0x18d   :  { %v598_v26 = vrot.slane %v562_v10, 3  ;;  %v534_v27 = vmax.f32 %v532_v6, %v533_v24  ;;  %v540_v28 = vrot.slane %v539_v25, 1  ;;  %v597_v29 = vsel %vm596_vm8, %v595_v23, %v594_v60 }
 0x18f   :  { %v555_v31 = vadd.f32 %v1127_v18, %v534_v27  ;;  %v541_v32 = vmax.f32 %v539_v25, %v540_v28  ;;  %v600_v30 = vsel %vm599_vm9, %v598_v26, %v597_v29 }
 0x191   :  { %v563_v33 = vmax.f32 %v555_v31, 0.0  ;;  %v556_v34 = vadd.f32 %v1127_v18, %v541_v32 }
 0x193   :  { %v601_v36 = vrot.slane %v563_v33, 2  ;;  %v564_v35 = vmax.f32 %v556_v34, 0.0 }
 0x195   :  { %v603_v37 = vsel %vm602_vm10, %v601_v36, %v600_v30  ;;  %v604_v38 = vrot.slane %v564_v35, 1 }
 0x197   :  { %v606_v39 = vsel %vm605_vm11, %v604_v38, %v603_v37 }
 0x198   :  { %750 = vmatmul.mubr.msk.f32.vlgmr.msra.gmra.mrb[4].mxu1 %vm485_vm4, %v606_v39 }
 0x26b   :  { %v675_v41 = vpop.f32.mrb[4].mxu1 }
 0x26c   :  { %v676_v42 = vadd.f32 %v728_v40, %v675_v41  ;;  %v751_v43 = vpop.f32.mrb[5].mxu1 }
 0x26e   :  { %v680_v44 = vsel %vm679_vm12, %v676_v42, -inf }
 0x26f   :  { %681 = vmax.xlane.f32.xlu0 %v680_v44 }
 0x2fc   :  { %v682_v18 = vpop.xlane.xlu0 %681 }
 0x2fd   :  { %v683_v49 = vsub.f32 %v676_v42, %v682_v18 }
 0x2ff   :  { %v684_v57 = vmul.f32 1.442695, %v683_v49 }
 0x301   :  { %806 = vpow2.f32 %v684_v57 }
 0x30b   :  { %v807_v46 = vpop.eup %806 }
 0x30c   :  { %v686_v47 = vsel %vm679_vm12, %v807_v46, 0.0 }
 0x30d   :  { %687 = vadd.xlane.f32.xlu1 %v686_v47 }
 0x39a   :  { %v688_v48 = vpop.xlane.xlu1 %687 }
 0x39b   :  { %808 = vlog2.f32 %v688_v48 }
 0x3a5   :  { %v809_v50 = vpop.eup %808 }
 0x3a6   :  { %v690_v3 = vmul.f32 0.6931472, %v809_v50 }
 0x3a8   :  { %v691_v45 = vsub.f32 %v683_v49, %v690_v3 }
 0x3aa   :  { %692 = vst.msk [vmem:[%s1164_s6] sm:$0xff] %vm679_vm12, %v691_v45 }

</bundles_post_ra>
